<compile_context>
chip_gen: v7x
topology: tpu7x:2x2x1
jax: 0.10.0
libtpu: 0.0.40
codegen_flags: <defaults>
</compile_context>

<pallas_src>
import functools

import jax
import jax.numpy as jnp
from jax.experimental import pallas as pl
from jax.experimental.pallas import tpu as pltpu

# Problem sizes (CartPole-v1: obs dim 4, 2 actions) and padded layout constants.
STATE_SPACE = 4
HIDDEN = 16
ACTION_SPACE = 2

LANES = 128        # lane width; hidden dim padded to this inside the slab
OUT_LANES = 8      # narrow, sublane-friendly output width (cols >= 2 are junk)

# Parameter-slab row layout (all f32, lane width = LANES):
W1_ROW = 0                     # rows [0, 8)    : w1 (4 x 16) in the top-left corner
B1_ROW = 8                     # rows [8, 16)   : b1 in row 8, cols < HIDDEN
W2_ROW = 16                    # rows [16, 144) : w2 (16 x 2) in the top-left corner
B2_ROW = W2_ROW + LANES        # rows [144, 152): b2 in row 144, cols < ACTION_SPACE
SLAB_ROWS = B2_ROW + 8         # 152 rows total (multiple of 8)


def _policy_kernel(x_ref, p_ref, out_ref):
    # x_ref  : (TB, 4)            raw CartPole states for this batch tile
    # p_ref  : (SLAB_ROWS, LANES) packed, zero-padded params (VMEM-resident)
    # out_ref: (TB, OUT_LANES)    narrow log-prob tile (cols >= 2 are junk)
    x = x_ref[...]                                    # (TB, 4), f32

    w1 = p_ref[W1_ROW:W1_ROW + STATE_SPACE, :]        # (4, 128)   cols >= 16 are 0
    b1 = p_ref[B1_ROW:B1_ROW + 1, :]                  # (1, 128)
    w2 = p_ref[W2_ROW:W2_ROW + LANES, :]              # (128, 128) rows >= 16 / cols >= 2 are 0
    b2 = p_ref[B2_ROW:B2_ROW + 1, :]                  # (1, 128)

    # affine1 + ReLU.  K = 4 is far below MXU granularity, so the first layer
    # is 4 broadcast mul-adds on the VPU (fully aligned, no small-K matmul).
    h = b1
    for s in range(STATE_SPACE):                      # unrolled at trace time
        h = h + x[:, s:s + 1] * w1[s:s + 1, :]
    h = jnp.maximum(h, 0.0)                           # (TB, 128); padded cols stay 0

    # affine2 on the MXU: fully (8,128)-aligned (TB,128) x (128,128).
    scores = jnp.dot(h, w2, preferred_element_type=jnp.float32) + b2   # (TB, 128)

    # log_softmax over the 2 real actions, specialized so there is no
    # cross-lane (XLU) reduction: one exp + one log (EUP), rest VPU.
    s0 = scores[:, 0:1]                               # (TB, 1)
    s1 = scores[:, 1:2]                               # (TB, 1)
    m = jnp.maximum(s0, s1)
    lse = m + jnp.log(1.0 + jnp.exp(-jnp.abs(s0 - s1)))    # (TB, 1), single exp

    # Narrow store: only OUT_LANES columns hit HBM.  Columns 0/1 are the real
    # log-probs; columns 2..7 hold (0 - lse) junk sliced away in the wrapper.
    out_ref[...] = scores[:, :OUT_LANES] - lse


def _round_up(n, m):
    return ((n + m - 1) // m) * m


def _cdiv(a, b):
    return (a + b - 1) // b


def _num_tensorcores():
    """Best-effort TensorCores-per-device count (v4 / v7x expose 2)."""
    try:
        kind = jax.devices()[0].device_kind.lower()
    except Exception:
        return 1
    return 2 if ("v4" in kind or "v7" in kind) else 1


def pack_params(w1, b1, w2, b2):
    """Pack (4,16)/(16,)/(16,2)/(2,) params into one lane-dense f32 slab.

    Call ONCE per optimizer update (not per forward step) and pass the result
    to `policy_estimator_forward`.
    """
    w1 = jnp.asarray(w1, jnp.float32)
    b1 = jnp.asarray(b1, jnp.float32).reshape(-1)
    w2 = jnp.asarray(w2, jnp.float32)
    b2 = jnp.asarray(b2, jnp.float32).reshape(-1)
    slab = jnp.zeros((SLAB_ROWS, LANES), jnp.float32)
    slab = slab.at[W1_ROW:W1_ROW + STATE_SPACE, :HIDDEN].set(w1)
    slab = slab.at[B1_ROW, :HIDDEN].set(b1)
    slab = slab.at[W2_ROW:W2_ROW + HIDDEN, :ACTION_SPACE].set(w2)
    slab = slab.at[B2_ROW, :ACTION_SPACE].set(b2)
    return slab


@functools.partial(jax.jit, static_argnames=("block_b",))
def policy_estimator_forward(x, param_slab, *, block_b=4096):
    """Forward pass: x (B, 4) f32 + pre-packed params -> log-probs (B, 2) f32.

    B can be a whole rollout's worth of stacked timesteps; the batch axis is
    tiled with up to `block_b` rows per grid step (multiple of 8).
    """
    x = jnp.asarray(x, jnp.float32)
    B, S = x.shape
    assert S == STATE_SPACE

    # Batch tiling: one big tile per grid step for stacked rollouts; for small
    # batches on multi-TC chips split into >=2 "parallel" tiles so both
    # TensorCores get work.  tb is always a multiple of 8 (sublanes).
    num_tc = _num_tensorcores()
    if B <= block_b:
        tb = max(_round_up(_cdiv(B, num_tc), 8), 8)
    else:
        tb = _round_up(block_b, 8)
    b_pad = _round_up(B, tb)

    # Explicit zero-pad of the ragged last tile (rows only, no column pad):
    # keeps every row that flows through exp/log finite and deterministic.
    if b_pad != B:
        x = jnp.concatenate(
            [x, jnp.zeros((b_pad - B, STATE_SPACE), jnp.float32)], axis=0)

    grid = (b_pad // tb,)

    out_pad = pl.pallas_call(
        _policy_kernel,
        out_shape=jax.ShapeDtypeStruct((b_pad, OUT_LANES), jnp.float32),
        grid=grid,
        in_specs=[
            # Raw (B, 4) states; last block dim == full array dim (legal).
            pl.BlockSpec((tb, STATE_SPACE), lambda i: (i, 0)),
            # Constant index_map -> params DMA'd once and stay VMEM-resident.
            pl.BlockSpec((SLAB_ROWS, LANES), lambda i: (0, 0)),
        ],
        out_specs=pl.BlockSpec((tb, OUT_LANES), lambda i: (i, 0)),
        compiler_params=pltpu.CompilerParams(
            dimension_semantics=("parallel",),
        ),
    )(x, param_slab)

    # Narrow slice back to the real (B, 2) log-probs (32 B/row re-read vs 512).
    return out_pad[:B, :ACTION_SPACE]


def _reference(x, w1, b1, w2, b2):
    h = jnp.maximum(x @ w1 + b1.reshape(1, -1), 0.0)
    s = h @ w2 + b2.reshape(1, -1)
    return jax.nn.log_softmax(s, axis=1)


if __name__ == "__main__":
    key = jax.random.PRNGKey(0)
    k_x1, k_x2, k_w1, k_b1, k_w2, k_b2 = jax.random.split(key, 6)

    # Deterministic init mimicking nn.Linear's uniform(-1/sqrt(fan_in), ...).
    bound1 = 1.0 / jnp.sqrt(jnp.float32(STATE_SPACE))
    bound2 = 1.0 / jnp.sqrt(jnp.float32(HIDDEN))
    w1 = jax.random.uniform(k_w1, (STATE_SPACE, HIDDEN), jnp.float32, -bound1, bound1)
    b1 = jax.random.uniform(k_b1, (HIDDEN,), jnp.float32, -bound1, bound1)
    w2 = jax.random.uniform(k_w2, (HIDDEN, ACTION_SPACE), jnp.float32, -bound2, bound2)
    b2 = jax.random.uniform(k_b2, (ACTION_SPACE,), jnp.float32, -bound2, bound2)

    # Pack parameters ONCE (re-done only after each optimizer step in the RL
    # loop), then reuse the slab across every forward call.
    slab = jax.block_until_ready(pack_params(w1, b1, w2, b2))

    # Case 1: small per-env-step batch (matches the original usage).
    x_small = jax.random.normal(k_x1, (8, STATE_SPACE), jnp.float32)
    out_small = jax.block_until_ready(policy_estimator_forward(x_small, slab))
    ref_small = _reference(x_small, w1, b1, w2, b2)
    assert out_small.shape == (8, ACTION_SPACE)
    assert jnp.allclose(out_small, ref_small, atol=1e-5, rtol=1e-5)
    assert jnp.allclose(jnp.sum(jnp.exp(out_small), axis=1), 1.0, atol=1e-5)

    # Case 2: a whole "rollout" of stacked timesteps in one call (reuses the
    # packed slab; exercises batch-row padding and the multi-tile grid path).
    x_roll = jax.random.normal(k_x2, (200, STATE_SPACE), jnp.float32)
    out_roll = jax.block_until_ready(policy_estimator_forward(x_roll, slab))
    ref_roll = _reference(x_roll, w1, b1, w2, b2)
    assert out_roll.shape == (200, ACTION_SPACE)
    assert jnp.allclose(out_roll, ref_roll, atol=1e-5, rtol=1e-5)
    assert jnp.allclose(jnp.sum(jnp.exp(out_roll), axis=1), 1.0, atol=1e-5)

    # TODO(synk): downstream Categorical sampling / chosen-action log-prob
    # gather from the REINFORCE loop (pltpu.prng_* fusion) is left outside the
    # kernel; the host-side episode bookkeeping has no Pallas equivalent.

    print("KERNEL_OK")
</pallas_src>

<mosaic_0001>
module attributes {stable_mosaic.version = 11 : i64} {
  func.func @_policy_kernel(%arg0: i32, %arg1: memref<8x4xf32, #tpu.memory_space<vmem>>, %arg2: memref<152x128xf32, #tpu.memory_space<vmem>>, %arg3: memref<8x8xf32, #tpu.memory_space<vmem>>) attributes {dimension_semantics = [#tpu.dimension_semantics<parallel>], iteration_bounds = array<i64: 1>, scalar_prefetch = 0 : i64, scratch_operands = 0 : i64, tpu.core_type = #tpu.core_type<tc>, window_params = [{transform_indices = @transform_0, window_bounds = array<i64: 8, 4>}, {pipeline_mode = #tpu.pipeline_mode<synchronous>, transform_indices = @transform_1, window_bounds = array<i64: 152, 128>}, {transform_indices = @transform_2, window_bounds = array<i64: 8, 8>}]} {
    %c0 = arith.constant 0 : index
    %c0_0 = arith.constant 0 : index
    %0 = vector.load %arg1[%c0, %c0_0] : memref<8x4xf32, #tpu.memory_space<vmem>>, vector<8x4xf32>
    %c0_1 = arith.constant 0 : index
    %c0_2 = arith.constant 0 : index
    %1 = vector.load %arg2[%c0_1, %c0_2] : memref<152x128xf32, #tpu.memory_space<vmem>>, vector<4x128xf32>
    %c8 = arith.constant 8 : index
    %c0_3 = arith.constant 0 : index
    %2 = vector.load %arg2[%c8, %c0_3] : memref<152x128xf32, #tpu.memory_space<vmem>>, vector<1x128xf32>
    %c16 = arith.constant 16 : index
    %c0_4 = arith.constant 0 : index
    %3 = vector.load %arg2[%c16, %c0_4] : memref<152x128xf32, #tpu.memory_space<vmem>>, vector<128x128xf32>
    %c144 = arith.constant 144 : index
    %c0_5 = arith.constant 0 : index
    %4 = vector.load %arg2[%c144, %c0_5] : memref<152x128xf32, #tpu.memory_space<vmem>>, vector<1x128xf32>
    %5 = vector.extract_strided_slice %0 {offsets = [0, 0], sizes = [8, 1], strides = [1, 1]} : vector<8x4xf32> to vector<8x1xf32>
    %6 = vector.extract_strided_slice %1 {offsets = [0, 0], sizes = [1, 128], strides = [1, 1]} : vector<4x128xf32> to vector<1x128xf32>
    %7 = vector.broadcast %5 : vector<8x1xf32> to vector<8x128xf32>
    %8 = vector.broadcast %6 : vector<1x128xf32> to vector<8x128xf32>
    %9 = arith.mulf %7, %8 : vector<8x128xf32>
    %10 = vector.broadcast %2 : vector<1x128xf32> to vector<8x128xf32>
    %11 = arith.addf %10, %9 : vector<8x128xf32>
    %12 = vector.extract_strided_slice %0 {offsets = [0, 1], sizes = [8, 1], strides = [1, 1]} : vector<8x4xf32> to vector<8x1xf32>
    %13 = vector.extract_strided_slice %1 {offsets = [1, 0], sizes = [1, 128], strides = [1, 1]} : vector<4x128xf32> to vector<1x128xf32>
    %14 = vector.broadcast %12 : vector<8x1xf32> to vector<8x128xf32>
    %15 = vector.broadcast %13 : vector<1x128xf32> to vector<8x128xf32>
    %16 = arith.mulf %14, %15 : vector<8x128xf32>
    %17 = arith.addf %11, %16 : vector<8x128xf32>
    %18 = vector.extract_strided_slice %0 {offsets = [0, 2], sizes = [8, 1], strides = [1, 1]} : vector<8x4xf32> to vector<8x1xf32>
    %19 = vector.extract_strided_slice %1 {offsets = [2, 0], sizes = [1, 128], strides = [1, 1]} : vector<4x128xf32> to vector<1x128xf32>
    %20 = vector.broadcast %18 : vector<8x1xf32> to vector<8x128xf32>
    %21 = vector.broadcast %19 : vector<1x128xf32> to vector<8x128xf32>
    %22 = arith.mulf %20, %21 : vector<8x128xf32>
    %23 = arith.addf %17, %22 : vector<8x128xf32>
    %24 = vector.extract_strided_slice %0 {offsets = [0, 3], sizes = [8, 1], strides = [1, 1]} : vector<8x4xf32> to vector<8x1xf32>
    %25 = vector.extract_strided_slice %1 {offsets = [3, 0], sizes = [1, 128], strides = [1, 1]} : vector<4x128xf32> to vector<1x128xf32>
    %26 = vector.broadcast %24 : vector<8x1xf32> to vector<8x128xf32>
    %27 = vector.broadcast %25 : vector<1x128xf32> to vector<8x128xf32>
    %28 = arith.mulf %26, %27 : vector<8x128xf32>
    %29 = arith.addf %23, %28 : vector<8x128xf32>
    %cst = arith.constant 0.000000e+00 : f32
    %30 = vector.broadcast %cst : f32 to vector<8x128xf32>
    %31 = arith.maximumf %29, %30 : vector<8x128xf32>
    %cst_6 = arith.constant dense<0.000000e+00> : vector<8x128xf32>
    %32 = tpu.matmul %31, %3, %cst_6 {dimension_numbers = #tpu.dot_dimension_numbers<[1], [0], [0], [1], [0, 0, 1, 1], [], []>} : vector<8x128xf32>, vector<128x128xf32>, vector<8x128xf32> -> vector<8x128xf32>
    %33 = vector.broadcast %4 : vector<1x128xf32> to vector<8x128xf32>
    %34 = arith.addf %32, %33 : vector<8x128xf32>
    %35 = vector.extract_strided_slice %34 {offsets = [0, 0], sizes = [8, 1], strides = [1, 1]} : vector<8x128xf32> to vector<8x1xf32>
    %36 = vector.extract_strided_slice %34 {offsets = [0, 1], sizes = [8, 1], strides = [1, 1]} : vector<8x128xf32> to vector<8x1xf32>
    %37 = arith.maximumf %35, %36 : vector<8x1xf32>
    %38 = arith.subf %35, %36 : vector<8x1xf32>
    %39 = math.absf %38 : vector<8x1xf32>
    %cst_7 = arith.constant 0.000000e+00 : f32
    %40 = vector.broadcast %cst_7 : f32 to vector<8x1xf32>
    %41 = arith.subf %40, %39 : vector<8x1xf32>
    %42 = math.exp %41 : vector<8x1xf32>
    %cst_8 = arith.constant 1.000000e+00 : f32
    %43 = vector.broadcast %cst_8 : f32 to vector<8x1xf32>
    %44 = arith.addf %43, %42 : vector<8x1xf32>
    %45 = math.log %44 : vector<8x1xf32>
    %46 = arith.addf %37, %45 : vector<8x1xf32>
    %47 = vector.extract_strided_slice %34 {offsets = [0, 0], sizes = [8, 8], strides = [1, 1]} : vector<8x128xf32> to vector<8x8xf32>
    %48 = vector.broadcast %46 : vector<8x1xf32> to vector<8x8xf32>
    %49 = arith.subf %47, %48 : vector<8x8xf32>
    %c0_9 = arith.constant 0 : index
    %c0_10 = arith.constant 0 : index
    %50 = vector.load %arg3[%c0_9, %c0_10] : memref<8x8xf32, #tpu.memory_space<vmem>>, vector<8x8xf32>
    tpu.vector_store %arg3[%c0_9, %c0_10], %49 {strides = array<i32>} : memref<8x8xf32, #tpu.memory_space<vmem>>, vector<8x8xf32>,
    return
  }
  func.func @transform_0(%arg0: i32) -> (i32, i32) {
    %c0_i32 = arith.constant 0 : i32
    %c0_i32_0 = arith.constant 0 : i32
    return %arg0, %c0_i32 : i32, i32
  }
  func.func @transform_1(%arg0: i32) -> (i32, i32) {
    %c0_i32 = arith.constant 0 : i32
    %c0_i32_0 = arith.constant 0 : i32
    %c0_i32_1 = arith.constant 0 : i32
    return %c0_i32, %c0_i32_0 : i32, i32
  }
  func.func @transform_2(%arg0: i32) -> (i32, i32) {
    %c0_i32 = arith.constant 0 : i32
    %c0_i32_0 = arith.constant 0 : i32
    return %arg0, %c0_i32 : i32, i32
  }
}

</mosaic_0001>

<bundles_post_ra>
// kernel: policy_estimator_forward.1
= control target key start
LH: loop header
LB: loop body
LE: loop exit
PB: predicated region body
PF: predicated region fallthrough
CT: control target
= control target key end

     0   :  { %7 = vsyncpa [#allocation3], 0  ;;  %s314_s9 = smov [#allocation2]   ;;  %s358_s0 = inlined_call_operand.vmem [shape: f32[8,4], index: 0, kind: input, shape index: {}]   ;;  %s359_s1 = inlined_call_operand.hbm [shape: f32[152,128], index: 1, kind: input, shape index: {}]   ;;  %s360_s2 = inlined_call_operand.vmem [shape: f32[8,8], index: 2, kind: output, shape index: {}]  }
   0x1   :  { %s15_s10 = sshll.u32 %s314_s9, 4  ;;  %s290_s13 = scalar_lea.hbm %s359_s1, 2432  ;;  %s16_s10 = int_to_ptr.vmem [resolvable:$true] %s15_s10 }
   0x2   :  { %p291_p0 = scmp.ne.s32.totalorder %s359_s1, %s290_s13  ;;  %p294_p1 = scmp.lt.u32.totalorder %s290_s13, %s359_s1 }
   0x4   :  { %p296_p2 = pnand %p294_p1, %p291_p0 }
   0x6   :  { %299 = shalt.err (!%p296_p2)
}
   0x7   :  { %s300_s18 = scalar_lea.vmem %s16_s10, 2432  ;;  %p305_p4 = scmp.lt.s32.totalorder %s16_s10, %s16_s10 }
   0x8   :  { %p301_p3 = scmp.ne.s32.totalorder %s16_s10, %s300_s18  ;;  %p306_p5 = scmp.lt.s32.totalorder %s300_s18, %s300_s18 }
   0xa   :  { %p307_p6 = por %p306_p5, %p305_p4 }
   0xc   :  { %p308_p7 = pnand %p307_p6, %p301_p3 }
   0xe   :  { %311 = shalt.err (!%p308_p7)
}
   0xf   :  { %s315_s19 = smov 128   ;;  %s316_s20 = smov 8  }
  0x10   :  { %21 = dma.hbm_to_vmem [thread:$0]  %s359_s1, 2432, %s16_s10, [#allocation3], %s315_s19, %s315_s19, %s316_s20  }
  0x11   :  { %312 = dma.done.wait [#allocation3], 2432  }
  0x12   :  { %313 = vsyncadd [#allocation3], 4294964864  ;;  %v317_v0 = vmov 0   ;;  %v318_v1 = vmov 2   ;;  %v319_v2 = vmov 0.0|0.0   ;;  %v25_v3 = vld [vmem:[%s358_s0] sm:$0xff]  ;;  %v50_v31 = vlaneseq }
  0x13   :  { %281 = vset.pattern.permute.xlu0 %v317_v0  ;;  %283 = vset.pattern.permute.xlu1 %v318_v1  ;;  %v28_v4 = vld [vmem:[#allocation2 + $0x10] sm:$0xff]  ;;  %v29_v5 = vld [vmem:[#allocation2 + $0x18] sm:$0xff]  ;;  %v30_v7 = vld [vmem:[#allocation2 + $0x20] sm:$0xff]  ;;  %v320_v12 = vmov 1   ;;  %v321_v13 = vmov 3   ;;  %vm322_vm0 = vmmov 0  }
  0x14   :  { %246 = vmatprep.subr.bf16.mxu0 %v319_v2  ;;  %47 = vperm.xlu0 %281, %v25_v3   ;;  %v247_v6 = vpack.c.bf16 %v29_v5, %v28_v4  ;;  %v31_v8 = vld [vmem:[#allocation2 + $0x28] sm:$0xff]  ;;  %v32_v10 = vld [vmem:[#allocation2 + $0x30] sm:$0xff]  ;;  %v33_v11 = vld [vmem:[#allocation2 + $0x38] sm:$0xff]  ;;  %v323_v21 = vmov 0.0   ;;  %v51_v32 = vshrl.u32 %v50_v31, 7  ;;  %s324_s0 = smov 127  }
  0x15   :  { %71 = vperm.xlu1 %283, %v25_v3   ;;  %v250_v9 = vpack.c.bf16 %v31_v8, %v30_v7  ;;  %v253_v14 = vpack.c.bf16 %v33_v11, %v32_v10  ;;  %v34_v15 = vld [vmem:[#allocation2 + $0x40] sm:$0xff]  ;;  %v35_v16 = vld [vmem:[#allocation2 + $0x48] sm:$0xff]  ;;  %v36_v18 = vld [vmem:[#allocation2 + $0x50] sm:$0xff]  ;;  %243 = vmatprep.mubr.msk.f32.mxu0 %vm322_vm0, %v323_v21  ;;  %vm185_vm1 = vcmask 64512  }
  0x16   :  { %248 = vmatpush3.bf16.msra.mxu0 %v247_v6  ;;  %v256_v17 = vpack.c.bf16 %v35_v16, %v34_v15  ;;  %v37_v19 = vld [vmem:[#allocation2 + $0x58] sm:$0xff]  ;;  %v38_v22 = vld [vmem:[#allocation2 + $0x60] sm:$0xff]  ;;  %v39_v23 = vld [vmem:[#allocation2 + $0x68] sm:$0xff]  ;;  %v52_v33 = vsub.s32 0, %v51_v32  ;;  %v66_v36 = vsub.s32 1, %v51_v32  ;;  %v76_v38 = vsub.s32 2, %v51_v32 }
  0x17   :  { %249 = vmatprep.subr.bf16.mxu0 %v319_v2  ;;  %v259_v20 = vpack.c.bf16 %v37_v19, %v36_v18  ;;  %v262_v24 = vpack.c.bf16 %v39_v23, %v38_v22  ;;  %v40_v25 = vld [vmem:[#allocation2 + $0x70] sm:$0xff]  ;;  %v41_v26 = vld [vmem:[#allocation2 + $0x78] sm:$0xff]  ;;  %v42_v28 = vld [vmem:[#allocation2 + $0x80] sm:$0xff]  ;;  %v86_v40 = vsub.s32 3, %v51_v32 }
  0x18   :  { %282 = vset.pattern.permute.xlu0 %v320_v12  ;;  %v265_v27 = vpack.c.bf16 %v41_v26, %v40_v25  ;;  %v43_v29 = vld [vmem:[#allocation2 + $0x88] sm:$0xff]  ;;  %v26_v34 = vld [vmem:[#allocation2] sm:$0xf]  ;;  %v193_v56 = vld [vmem:[#allocation2 + $0x90] ss:$0 sm:$0xff] }
  0x19   :  { %284 = vset.pattern.permute.xlu1 %v321_v13  ;;  %61 = vperm.xlu0 %282, %v25_v3   ;;  %v268_v30 = vpack.c.bf16 %v43_v29, %v42_v28  ;;  %v53_v35 = vrot.slane %v26_v34, %v52_v33  ;;  %v67_v42 = vrot.slane %v26_v34, %v66_v36  ;;  %v192_v43 = vld [vmem:[#allocation2 + $0x8] ss:$0 sm:$0xff] }
  0x1a   :  { %81 = vperm.xlu1 %284, %v25_v3   ;;  %251 = vmatpush3.bf16.msra.mxu0 %v250_v9  ;;  %v77_v44 = vrot.slane %v26_v34, %v76_v38  ;;  %v87_v45 = vrot.slane %v26_v34, %v86_v40 }
  0x1b   :  { %252 = vmatprep.subr.bf16.mxu0 %v319_v2 }
  0x1d   :  { %285 = vset.pattern.permute.xlu0 %v317_v0 }
  0x1e   :  { %254 = vmatpush3.bf16.msra.mxu0 %v253_v14 }
  0x1f   :  { %255 = vmatprep.subr.bf16.mxu0 %v319_v2 }
  0x22   :  { %257 = vmatpush3.bf16.msra.mxu0 %v256_v17 }
  0x23   :  { %258 = vmatprep.subr.bf16.mxu0 %v319_v2 }
  0x26   :  { %260 = vmatpush3.bf16.msra.mxu0 %v259_v20 }
  0x27   :  { %261 = vmatprep.subr.bf16.mxu0 %v319_v2 }
  0x2a   :  { %263 = vmatpush3.bf16.msra.mxu0 %v262_v24 }
  0x2b   :  { %264 = vmatprep.subr.bf16.mxu0 %v319_v2 }
  0x2e   :  { %266 = vmatpush3.bf16.msra.mxu0 %v265_v27 }
  0x2f   :  { %267 = vmatprep.subr.bf16.mxu0 %v319_v2 }
  0x32   :  { %269 = vmatpush3.bf16.msra.mxu0 %v268_v30 }
  0x93   :  { %v48_v37 = vpop.permute.xlu0 %47 }
  0x94   :  { %v72_v39 = vpop.permute.xlu1 %71  ;;  %v54_v41 = vmul.f32 %v53_v35, %v48_v37 }
  0x95   :  { %v78_v50 = vmul.f32 %v77_v44, %v72_v39 }
  0x96   :  { %v59_v48 = vadd.f32 %v192_v43, %v54_v41 }
  0x98   :  { %v62_v46 = vpop.permute.xlu0 %61 }
  0x99   :  { %v82_v47 = vpop.permute.xlu1 %81  ;;  %v68_v49 = vmul.f32 %v67_v42, %v62_v46 }
  0x9a   :  { %v88_v52 = vmul.f32 %v87_v45, %v82_v47 }
  0x9b   :  { %v69_v51 = vadd.f32 %v68_v49, %v59_v48 }
  0x9d   :  { %v79_v53 = vadd.f32 %v78_v50, %v69_v51 }
  0x9f   :  { %v89_v54 = vadd.f32 %v88_v52, %v79_v53 }
  0xa1   :  { %v90_v55 = vmax.f32 %v89_v54, 0.0 }
  0xa3   :  { %244 = vmatmul.mubr.f32.vlgmr.msra.gmra.mrb[0].mxu0 %v90_v55 }
 0x176   :  { %v161_v57 = vpop.f32.mrb[0].mxu0 }
 0x177   :  { %v162_v58 = vadd.f32 %v193_v56, %v161_v57  ;;  %v245_v59 = vpop.f32.mrb[1].mxu0 }
 0x179   :  { %166 = vrot.lane.b32.xlu1 %v162_v58, %s324_s0 }
 0x1eb   :  { %v167_v60 = vpop.permute.xlu1 %166 }
 0x1ec   :  { %v170_v61 = vsub.f32 %v162_v58, %v167_v60  ;;  %v169_v4 = vmax.f32 %v162_v58, %v167_v60 }
 0x1ee   :  { %v171_v62 = vand.u32 2147483647, %v170_v61 }
 0x1f0   :  { %v172_v63 = vsub.f32 0.0, %v171_v62 }
 0x1f2   :  { %v173_v0 = vmul.f32 1.442695, %v172_v63 }
 0x1f4   :  { %286 = vpow2.f32 %v173_v0 }
 0x1fe   :  { %v287_v1 = vpop.eup %286 }
 0x1ff   :  { %v175_v2 = vadd.f32 1.0, %v287_v1 }
 0x201   :  { %288 = vlog2.f32 %v175_v2 }
 0x20b   :  { %v289_v3 = vpop.eup %288 }
 0x20c   :  { %v177_v5 = vmul.f32 0.6931472, %v289_v3 }
 0x20e   :  { %v178_v6 = vadd.f32 %v177_v5, %v169_v4 }
 0x210   :  { %181 = vperm.xlu0 %285, %v178_v6  }
 0x28f   :  { %v182_v7 = vpop.permute.xlu0 %181 }
 0x290   :  { %v184_v8 = vsub.f32 %v162_v58, %v182_v7 }
 0x292   :  { %186 = vst.msk [vmem:[%s360_s2] sm:$0xff] %vm185_vm1, %v184_v8 }
 0x293   :  { %191 = vsyncpa [#allocation3], 1 }

</bundles_post_ra>
